<compile_context>
chip_gen: v6e
topology: v6e:2x2x1
jax: 0.10.0
libtpu: 0.0.40
codegen_flags: <defaults>
</compile_context>

<pallas_src>
import jax
import jax.numpy as jnp
from jax.experimental import pallas as pl
from jax.experimental.pallas import tpu as pltpu


_GELU_C = 0.7978845608028654  # sqrt(2/pi)


def _gelu_tanh(x):
    # TODO(synk): PyTorch nn.GELU() uses the exact erf form; erf lowering is not guaranteed
    # in Mosaic, so we use the standard tanh approximation (max abs error ~1e-3).
    return 0.5 * x * (1.0 + jnp.tanh(_GELU_C * (x + 0.044715 * (x * x * x))))


def poly_mlp_kernel(x_ref, w1_ref, b1_ref, wi_ref, bi_ref, w2_ref, b2_ref, o_ref):
    x = x_ref[...].astype(jnp.float32)        # (bm, 4)
    w1 = w1_ref[...].astype(jnp.float32)      # (4, 64)   main layer 0
    wi = wi_ref[...].astype(jnp.float32)      # (4, 64)   inject layer 0
    h1 = b1_ref[...].astype(jnp.float32)      # (1, 64)
    hi = bi_ref[...].astype(jnp.float32)      # (1, 64)

    # K=4 matmuls as unrolled VPU broadcast-FMAs (a K=4 MXU pass would be ~1-3% utilized).
    for k in range(w1_ref.shape[0]):
        xk = x[:, k:k + 1]                    # (bm, 1) — lane-broadcasts below
        h1 = h1 + xk * w1[k:k + 1, :]
        hi = hi + xk * wi[k:k + 1, :]

    # GELU gate (f32 elementwise on VPU/EUP)
    h = _gelu_tanh(h1) * _gelu_tanh(hi)       # (bm, 64)

    # Second layer on the MXU, f32 accumulation.
    out = jnp.dot(h, w2_ref[...].astype(jnp.float32),
                  preferred_element_type=jnp.float32)
    out = out + b2_ref[...].astype(jnp.float32)
    o_ref[...] = out.astype(o_ref.dtype)


def _round_up(n, m):
    return ((n + m - 1) // m) * m


def poly_mlp_forward(x, params, *, block_m=512, out_dtype=jnp.bfloat16):
    """Fused PolyMLP forward. params = [(W1,b1), (Wi,bi), (W2,b2)]."""
    (w1, b1), (wi, bi), (w2, b2) = params
    B, d_in = x.shape
    d_h = w1.shape[1]
    d_out = w2.shape[1]

    # Batch tile: big (512 default) for MXU/pipeline efficiency; 8-row multiple for f32
    # output, 16-row for sub-32-bit output. Pad the batch instead of asserting divisibility.
    min_bm = 16 if jnp.dtype(out_dtype).itemsize < 4 else 8
    bm = max(min_bm, min(int(block_m), _round_up(B, min_bm)))
    bm = _round_up(bm, min_bm)
    B_pad = _round_up(B, bm)
    if B_pad != B:
        x = jnp.pad(x, ((0, B_pad - B), (0, 0)))
    grid = (B_pad // bm,)

    weight_bytes = sum(int(a.size) * a.dtype.itemsize for a in (w1, b1, wi, bi, w2, b2))
    cost = pl.CostEstimate(
        flops=2 * B_pad * (2 * d_in * d_h + d_h * d_out),
        transcendentals=2 * B_pad * d_h,  # two GELUs (tanh) per row
        bytes_accessed=B_pad * (d_in * x.dtype.itemsize
                                + d_out * jnp.dtype(out_dtype).itemsize) + weight_bytes,
    )

    out = pl.pallas_call(
        poly_mlp_kernel,
        out_shape=jax.ShapeDtypeStruct((B_pad, d_out), out_dtype),
        grid_spec=pltpu.PrefetchScalarGridSpec(
            num_scalar_prefetch=0,
            grid=grid,
            in_specs=[
                pl.BlockSpec((bm, d_in), lambda i: (i, 0)),     # x tile (streamed)
                pl.BlockSpec((d_in, d_h), lambda i: (0, 0)),    # W1 (resident)
                pl.BlockSpec((1, d_h), lambda i: (0, 0)),       # b1 (resident)
                pl.BlockSpec((d_in, d_h), lambda i: (0, 0)),    # W_inject (resident)
                pl.BlockSpec((1, d_h), lambda i: (0, 0)),       # b_inject (resident)
                pl.BlockSpec((d_h, d_out), lambda i: (0, 0)),   # W2 (resident)
                pl.BlockSpec((1, d_out), lambda i: (0, 0)),     # b2 (resident)
            ],
            out_specs=pl.BlockSpec((bm, d_out), lambda i: (i, 0)),
        ),
        compiler_params=pltpu.CompilerParams(
            dimension_semantics=("parallel",),       # batch axis shards across TCs (v7x)
            vmem_limit_bytes=32 * 1024 * 1024,       # safe on v5e/v6e/v7x; plenty of headroom
        ),
        cost_estimate=cost,
    )(x, w1, b1, wi, bi, w2, b2)

    return out[:B]


def poly_mlp_reference(x, params):
    (w1, b1), (wi, bi), (w2, b2) = params
    h = _gelu_tanh(x @ w1 + b1) * _gelu_tanh(x @ wi + bi)
    return h @ w2 + b2


def init_params(key, layers=(4, 64, 128), dtype=jnp.float32):
    # Deterministic init mimicking nn.Linear's uniform(-1/sqrt(fan_in), 1/sqrt(fan_in)).
    # NOTE: specialized to len(layers) == 3 (one hidden stage), the module's default.
    def linear(k, fan_in, fan_out):
        kw, kb = jax.random.split(k)
        bound = 1.0 / (fan_in ** 0.5)
        w = jax.random.uniform(kw, (fan_in, fan_out), dtype, -bound, bound)
        b = jax.random.uniform(kb, (1, fan_out), dtype, -bound, bound)
        return w, b

    k1, k2, k3 = jax.random.split(key, 3)
    return [
        linear(k1, layers[0], layers[1]),    # main:   Linear(4, 64)  (+GELU)
        linear(k2, layers[0], layers[1]),    # inject: Linear(4, 64)  (+GELU)
        linear(k3, layers[-2], layers[-1]),  # head:   Linear(64, 128)
    ]


if __name__ == "__main__":
    key = jax.random.PRNGKey(0)
    key, kx, kp = jax.random.split(key, 3)
    layers = (4, 64, 128)
    params = init_params(kp, layers)

    # Small shape consistent with the module: (batch=8, in_features=4), exact-dtype path.
    x = jax.random.normal(kx, (8, layers[0]), jnp.float32)
    out_f32 = jax.block_until_ready(poly_mlp_forward(x, params, out_dtype=jnp.float32))
    ref = poly_mlp_reference(x, params)
    assert out_f32.shape == (8, layers[-1])
    assert jnp.allclose(out_f32, ref, atol=1e-4, rtol=1e-4)

    # Performance-default path: batch=1024 -> block_m=512, 2-step grid, bf16 writeback.
    xl = jax.random.normal(kx, (1024, layers[0]), jnp.float32)
    out_bf16 = jax.block_until_ready(poly_mlp_forward(xl, params))
    refl = poly_mlp_reference(xl, params)
    assert out_bf16.dtype == jnp.bfloat16
    assert jnp.allclose(out_bf16.astype(jnp.float32), refl, atol=3e-2, rtol=3e-2)

    print("KERNEL_OK")
</pallas_src>

<mosaic_0001>
module attributes {stable_mosaic.version = 11 : i64} {
  func.func @poly_mlp_kernel(%arg0: i32, %arg1: memref<8x4xf32, #tpu.memory_space<vmem>>, %arg2: memref<4x64xf32, #tpu.memory_space<vmem>>, %arg3: memref<1x64xf32, #tpu.memory_space<vmem>>, %arg4: memref<4x64xf32, #tpu.memory_space<vmem>>, %arg5: memref<1x64xf32, #tpu.memory_space<vmem>>, %arg6: memref<64x128xf32, #tpu.memory_space<vmem>>, %arg7: memref<1x128xf32, #tpu.memory_space<vmem>>, %arg8: memref<8x128xf32, #tpu.memory_space<vmem>>) attributes {dimension_semantics = [#tpu.dimension_semantics<parallel>], iteration_bounds = array<i64: 1>, scalar_prefetch = 0 : i64, scratch_operands = 0 : i64, tpu.core_type = #tpu.core_type<tc>, window_params = [{transform_indices = @transform_0, window_bounds = array<i64: 8, 4>}, {pipeline_mode = #tpu.pipeline_mode<synchronous>, transform_indices = @transform_1, window_bounds = array<i64: 4, 64>}, {pipeline_mode = #tpu.pipeline_mode<synchronous>, transform_indices = @transform_2, window_bounds = array<i64: 1, 64>}, {pipeline_mode = #tpu.pipeline_mode<synchronous>, transform_indices = @transform_3, window_bounds = array<i64: 4, 64>}, {pipeline_mode = #tpu.pipeline_mode<synchronous>, transform_indices = @transform_4, window_bounds = array<i64: 1, 64>}, {pipeline_mode = #tpu.pipeline_mode<synchronous>, transform_indices = @transform_5, window_bounds = array<i64: 64, 128>}, {pipeline_mode = #tpu.pipeline_mode<synchronous>, transform_indices = @transform_6, window_bounds = array<i64: 1, 128>}, {transform_indices = @transform_7, window_bounds = array<i64: 8, 128>}]} {
    %c0 = arith.constant 0 : index
    %c0_0 = arith.constant 0 : index
    %0 = vector.load %arg1[%c0, %c0_0] : memref<8x4xf32, #tpu.memory_space<vmem>>, vector<8x4xf32>
    %c0_1 = arith.constant 0 : index
    %c0_2 = arith.constant 0 : index
    %1 = vector.load %arg2[%c0_1, %c0_2] : memref<4x64xf32, #tpu.memory_space<vmem>>, vector<4x64xf32>
    %c0_3 = arith.constant 0 : index
    %c0_4 = arith.constant 0 : index
    %2 = vector.load %arg4[%c0_3, %c0_4] : memref<4x64xf32, #tpu.memory_space<vmem>>, vector<4x64xf32>
    %c0_5 = arith.constant 0 : index
    %c0_6 = arith.constant 0 : index
    %3 = vector.load %arg3[%c0_5, %c0_6] : memref<1x64xf32, #tpu.memory_space<vmem>>, vector<1x64xf32>
    %c0_7 = arith.constant 0 : index
    %c0_8 = arith.constant 0 : index
    %4 = vector.load %arg5[%c0_7, %c0_8] : memref<1x64xf32, #tpu.memory_space<vmem>>, vector<1x64xf32>
    %5 = vector.extract_strided_slice %0 {offsets = [0, 0], sizes = [8, 1], strides = [1, 1]} : vector<8x4xf32> to vector<8x1xf32>
    %6 = vector.extract_strided_slice %1 {offsets = [0, 0], sizes = [1, 64], strides = [1, 1]} : vector<4x64xf32> to vector<1x64xf32>
    %7 = vector.broadcast %5 : vector<8x1xf32> to vector<8x64xf32>
    %8 = vector.broadcast %6 : vector<1x64xf32> to vector<8x64xf32>
    %9 = arith.mulf %7, %8 : vector<8x64xf32>
    %10 = vector.broadcast %3 : vector<1x64xf32> to vector<8x64xf32>
    %11 = arith.addf %10, %9 : vector<8x64xf32>
    %12 = vector.extract_strided_slice %2 {offsets = [0, 0], sizes = [1, 64], strides = [1, 1]} : vector<4x64xf32> to vector<1x64xf32>
    %13 = vector.broadcast %5 : vector<8x1xf32> to vector<8x64xf32>
    %14 = vector.broadcast %12 : vector<1x64xf32> to vector<8x64xf32>
    %15 = arith.mulf %13, %14 : vector<8x64xf32>
    %16 = vector.broadcast %4 : vector<1x64xf32> to vector<8x64xf32>
    %17 = arith.addf %16, %15 : vector<8x64xf32>
    %18 = vector.extract_strided_slice %0 {offsets = [0, 1], sizes = [8, 1], strides = [1, 1]} : vector<8x4xf32> to vector<8x1xf32>
    %19 = vector.extract_strided_slice %1 {offsets = [1, 0], sizes = [1, 64], strides = [1, 1]} : vector<4x64xf32> to vector<1x64xf32>
    %20 = vector.broadcast %18 : vector<8x1xf32> to vector<8x64xf32>
    %21 = vector.broadcast %19 : vector<1x64xf32> to vector<8x64xf32>
    %22 = arith.mulf %20, %21 : vector<8x64xf32>
    %23 = arith.addf %11, %22 : vector<8x64xf32>
    %24 = vector.extract_strided_slice %2 {offsets = [1, 0], sizes = [1, 64], strides = [1, 1]} : vector<4x64xf32> to vector<1x64xf32>
    %25 = vector.broadcast %18 : vector<8x1xf32> to vector<8x64xf32>
    %26 = vector.broadcast %24 : vector<1x64xf32> to vector<8x64xf32>
    %27 = arith.mulf %25, %26 : vector<8x64xf32>
    %28 = arith.addf %17, %27 : vector<8x64xf32>
    %29 = vector.extract_strided_slice %0 {offsets = [0, 2], sizes = [8, 1], strides = [1, 1]} : vector<8x4xf32> to vector<8x1xf32>
    %30 = vector.extract_strided_slice %1 {offsets = [2, 0], sizes = [1, 64], strides = [1, 1]} : vector<4x64xf32> to vector<1x64xf32>
    %31 = vector.broadcast %29 : vector<8x1xf32> to vector<8x64xf32>
    %32 = vector.broadcast %30 : vector<1x64xf32> to vector<8x64xf32>
    %33 = arith.mulf %31, %32 : vector<8x64xf32>
    %34 = arith.addf %23, %33 : vector<8x64xf32>
    %35 = vector.extract_strided_slice %2 {offsets = [2, 0], sizes = [1, 64], strides = [1, 1]} : vector<4x64xf32> to vector<1x64xf32>
    %36 = vector.broadcast %29 : vector<8x1xf32> to vector<8x64xf32>
    %37 = vector.broadcast %35 : vector<1x64xf32> to vector<8x64xf32>
    %38 = arith.mulf %36, %37 : vector<8x64xf32>
    %39 = arith.addf %28, %38 : vector<8x64xf32>
    %40 = vector.extract_strided_slice %0 {offsets = [0, 3], sizes = [8, 1], strides = [1, 1]} : vector<8x4xf32> to vector<8x1xf32>
    %41 = vector.extract_strided_slice %1 {offsets = [3, 0], sizes = [1, 64], strides = [1, 1]} : vector<4x64xf32> to vector<1x64xf32>
    %42 = vector.broadcast %40 : vector<8x1xf32> to vector<8x64xf32>
    %43 = vector.broadcast %41 : vector<1x64xf32> to vector<8x64xf32>
    %44 = arith.mulf %42, %43 : vector<8x64xf32>
    %45 = arith.addf %34, %44 : vector<8x64xf32>
    %46 = vector.extract_strided_slice %2 {offsets = [3, 0], sizes = [1, 64], strides = [1, 1]} : vector<4x64xf32> to vector<1x64xf32>
    %47 = vector.broadcast %40 : vector<8x1xf32> to vector<8x64xf32>
    %48 = vector.broadcast %46 : vector<1x64xf32> to vector<8x64xf32>
    %49 = arith.mulf %47, %48 : vector<8x64xf32>
    %50 = arith.addf %39, %49 : vector<8x64xf32>
    %cst = arith.constant 5.000000e-01 : f32
    %51 = vector.broadcast %cst : f32 to vector<8x64xf32>
    %52 = arith.mulf %51, %45 : vector<8x64xf32>
    %53 = arith.mulf %45, %45 : vector<8x64xf32>
    %54 = arith.mulf %53, %45 : vector<8x64xf32>
    %cst_9 = arith.constant 4.471500e-02 : f32
    %55 = vector.broadcast %cst_9 : f32 to vector<8x64xf32>
    %56 = arith.mulf %55, %54 : vector<8x64xf32>
    %57 = arith.addf %45, %56 : vector<8x64xf32>
    %cst_10 = arith.constant 0.797884583 : f32
    %58 = vector.broadcast %cst_10 : f32 to vector<8x64xf32>
    %59 = arith.mulf %58, %57 : vector<8x64xf32>
    %60 = math.tanh %59 : vector<8x64xf32>
    %cst_11 = arith.constant 1.000000e+00 : f32
    %61 = vector.broadcast %cst_11 : f32 to vector<8x64xf32>
    %62 = arith.addf %61, %60 : vector<8x64xf32>
    %63 = arith.mulf %52, %62 : vector<8x64xf32>
    %cst_12 = arith.constant 5.000000e-01 : f32
    %64 = vector.broadcast %cst_12 : f32 to vector<8x64xf32>
    %65 = arith.mulf %64, %50 : vector<8x64xf32>
    %66 = arith.mulf %50, %50 : vector<8x64xf32>
    %67 = arith.mulf %66, %50 : vector<8x64xf32>
    %cst_13 = arith.constant 4.471500e-02 : f32
    %68 = vector.broadcast %cst_13 : f32 to vector<8x64xf32>
    %69 = arith.mulf %68, %67 : vector<8x64xf32>
    %70 = arith.addf %50, %69 : vector<8x64xf32>
    %cst_14 = arith.constant 0.797884583 : f32
    %71 = vector.broadcast %cst_14 : f32 to vector<8x64xf32>
    %72 = arith.mulf %71, %70 : vector<8x64xf32>
    %73 = math.tanh %72 : vector<8x64xf32>
    %cst_15 = arith.constant 1.000000e+00 : f32
    %74 = vector.broadcast %cst_15 : f32 to vector<8x64xf32>
    %75 = arith.addf %74, %73 : vector<8x64xf32>
    %76 = arith.mulf %65, %75 : vector<8x64xf32>
    %77 = arith.mulf %63, %76 : vector<8x64xf32>
    %c0_16 = arith.constant 0 : index
    %c0_17 = arith.constant 0 : index
    %78 = vector.load %arg6[%c0_16, %c0_17] : memref<64x128xf32, #tpu.memory_space<vmem>>, vector<64x128xf32>
    %cst_18 = arith.constant dense<0.000000e+00> : vector<8x128xf32>
    %79 = tpu.matmul %77, %78, %cst_18 {dimension_numbers = #tpu.dot_dimension_numbers<[1], [0], [0], [1], [0, 0, 1, 1], [], []>} : vector<8x64xf32>, vector<64x128xf32>, vector<8x128xf32> -> vector<8x128xf32>
    %c0_19 = arith.constant 0 : index
    %c0_20 = arith.constant 0 : index
    %80 = vector.load %arg7[%c0_19, %c0_20] : memref<1x128xf32, #tpu.memory_space<vmem>>, vector<1x128xf32>
    %81 = vector.broadcast %80 : vector<1x128xf32> to vector<8x128xf32>
    %82 = arith.addf %79, %81 : vector<8x128xf32>
    %c0_21 = arith.constant 0 : index
    %c0_22 = arith.constant 0 : index
    %83 = vector.load %arg8[%c0_21, %c0_22] : memref<8x128xf32, #tpu.memory_space<vmem>>, vector<8x128xf32>
    tpu.vector_store %arg8[%c0_21, %c0_22], %82 {strides = array<i32>} : memref<8x128xf32, #tpu.memory_space<vmem>>, vector<8x128xf32>,
    return
  }
  func.func @transform_0(%arg0: i32) -> (i32, i32) {
    %c0_i32 = arith.constant 0 : i32
    %c0_i32_0 = arith.constant 0 : i32
    return %arg0, %c0_i32 : i32, i32
  }
  func.func @transform_1(%arg0: i32) -> (i32, i32) {
    %c0_i32 = arith.constant 0 : i32
    %c0_i32_0 = arith.constant 0 : i32
    %c0_i32_1 = arith.constant 0 : i32
    return %c0_i32, %c0_i32_0 : i32, i32
  }
  func.func @transform_2(%arg0: i32) -> (i32, i32) {
    %c0_i32 = arith.constant 0 : i32
    %c0_i32_0 = arith.constant 0 : i32
    %c0_i32_1 = arith.constant 0 : i32
    return %c0_i32, %c0_i32_0 : i32, i32
  }
  func.func @transform_3(%arg0: i32) -> (i32, i32) {
    %c0_i32 = arith.constant 0 : i32
    %c0_i32_0 = arith.constant 0 : i32
    %c0_i32_1 = arith.constant 0 : i32
    return %c0_i32, %c0_i32_0 : i32, i32
  }
  func.func @transform_4(%arg0: i32) -> (i32, i32) {
    %c0_i32 = arith.constant 0 : i32
    %c0_i32_0 = arith.constant 0 : i32
    %c0_i32_1 = arith.constant 0 : i32
    return %c0_i32, %c0_i32_0 : i32, i32
  }
  func.func @transform_5(%arg0: i32) -> (i32, i32) {
    %c0_i32 = arith.constant 0 : i32
    %c0_i32_0 = arith.constant 0 : i32
    %c0_i32_1 = arith.constant 0 : i32
    return %c0_i32, %c0_i32_0 : i32, i32
  }
  func.func @transform_6(%arg0: i32) -> (i32, i32) {
    %c0_i32 = arith.constant 0 : i32
    %c0_i32_0 = arith.constant 0 : i32
    %c0_i32_1 = arith.constant 0 : i32
    return %c0_i32, %c0_i32_0 : i32, i32
  }
  func.func @transform_7(%arg0: i32) -> (i32, i32) {
    %c0_i32 = arith.constant 0 : i32
    %c0_i32_0 = arith.constant 0 : i32
    return %arg0, %c0_i32 : i32, i32
  }
}

</mosaic_0001>

<bundles_post_ra>
// kernel: tpu_custom_call.1
= control target key start
LH: loop header
LB: loop body
LE: loop exit
PB: predicated region body
PF: predicated region fallthrough
CT: control target
= control target key end

     0   :  { %12 = vsyncpa [#allocation3], 0  ;;  %s416_s0 = inlined_call_operand.vmem [shape: f32[8,4], index: 0, kind: input, shape index: {}]   ;;  %s417_s1 = inlined_call_operand.vmem [shape: f32[4,64], index: 1, kind: input, shape index: {}]   ;;  %s418_s2 = inlined_call_operand.vmem [shape: f32[1,64], index: 2, kind: input, shape index: {}]   ;;  %s419_s3 = inlined_call_operand.vmem [shape: f32[4,64], index: 3, kind: input, shape index: {}]   ;;  %s420_s4 = inlined_call_operand.vmem [shape: f32[1,64], index: 4, kind: input, shape index: {}]   ;;  %s421_s5 = inlined_call_operand.hbm [shape: f32[64,128], index: 5, kind: input, shape index: {}]   ;;  %s422_s6 = inlined_call_operand.vmem [shape: f32[1,128], index: 6, kind: input, shape index: {}]   ;;  %s423_s7 = inlined_call_operand.hbm [shape: f32[8,128], index: 7, kind: output, shape index: {}]  }
   0x1   :  { %13 = vsyncpa [#allocation4], 0  ;;  %s342_s24 = smov [#allocation2]  }
   0x2   :  { %s29_s25 = sshll.u32 %s342_s24, 4  ;;  %s30_s25 = int_to_ptr.vmem [resolvable:$true] %s29_s25 }
   0x3   :  { %s306_s26 = scalar_lea.vmem %s30_s25, 1024  ;;  %p311_p1 = scmp.lt.s32.totalorder %s30_s25, %s30_s25 }
   0x4   :  { %p307_p0 = scmp.ne.s32.totalorder %s30_s25, %s306_s26  ;;  %p312_p2 = scmp.lt.s32.totalorder %s306_s26, %s306_s26 }
   0x6   :  { %p313_p3 = por %p312_p2, %p311_p1 }
   0x8   :  { %p314_p4 = pnand %p313_p3, %p307_p0 }
   0xa   :  { %317 = shalt.err (!%p314_p4)
}
   0xb   :  { %s343_s27 = smov 128   ;;  %s344_s28 = smov 8  }
   0xc   :  { %35 = dma.hbm_to_vmem [thread:$0]  %s421_s5, 1024, %s30_s25, [#allocation3], %s343_s27, %s343_s27, %s344_s28  }
   0xd   :  { %338 = dma.done.wait [#allocation3], 1024  }
   0xe   :  { %339 = vsyncadd [#allocation3], 4294966272  ;;  %v345_v0 = vmov 0   ;;  %v346_v1 = vmov 2   ;;  %v41_v2 = vld [vmem:[%s416_s0] sm:$0xff]  ;;  %v347_v3 = vmov 1   ;;  %v51_v14 = vlaneseq }
   0xf   :  { %289 = vset.pattern.permute.xlu0 %v345_v0  ;;  %291 = vset.pattern.permute.xlu1 %v346_v1  ;;  %v348_v4 = vmov 3   ;;  %v149_v5 = vld [vmem:[#allocation2 + $0x38] sm:$0xff]  ;;  %v349_v6 = vmov 0.0   ;;  %v148_v7 = vld [vmem:[#allocation2 + $0x30] sm:$0xff]  ;;  %vm350_vm0 = vmmov 0   ;;  %v147_v8 = vld [vmem:[#allocation2 + $0x28] sm:$0xff] }
  0x10   :  { %48 = vperm.xlu0 %289, %v41_v2   ;;  %92 = vperm.xlu1 %291, %v41_v2   ;;  %v146_v9 = vld [vmem:[#allocation2 + $0x20] sm:$0xff]  ;;  %v145_v10 = vld [vmem:[#allocation2 + $0x18] sm:$0xff]  ;;  %v144_v11 = vld [vmem:[#allocation2 + $0x10] sm:$0xff]  ;;  %v52_v15 = vshrl.u32 %v51_v14, 7  ;;  %vm157_vm1 = vcmask 523264  }
  0x11   :  { %260 = vmatprep.subr.mxu0 %v349_v6  ;;  %276 = vmatprep.mubr.msk.f32.mxu0 %vm350_vm0, %v349_v6  ;;  %v143_v12 = vld [vmem:[#allocation2 + $0x8] sm:$0xff]  ;;  %v142_v13 = vld [vmem:[#allocation2] sm:$0xff] }
  0x12   :  { %261 = vmatpush3.msra.mxu0 %v149_v5  ;;  %v53_v16 = vsub.s32 0, %v52_v15  ;;  %v42_v17 = vld [vmem:[%s417_s1] sm:$0xf]  ;;  %v81_v21 = vsub.s32 1, %v52_v15  ;;  %v97_v22 = vsub.s32 2, %v52_v15  ;;  %v113_v25 = vsub.s32 3, %v52_v15 }
  0x13   :  { %262 = vmatprep.subr.mxu0 %v349_v6  ;;  %v43_v18 = vld [vmem:[%s419_s3] sm:$0xf] }
  0x14   :  { %290 = vset.pattern.permute.xlu0 %v347_v3  ;;  %292 = vset.pattern.permute.xlu1 %v348_v4  ;;  %v54_v19 = vrot.slane %v42_v17, %v53_v16  ;;  %v66_v20 = vrot.slane %v43_v18, %v53_v16  ;;  %v82_v28 = vrot.slane %v42_v17, %v81_v21  ;;  %v247_v30 = vld [vmem:[%s418_s2] ss:$0 sm:$0xff] }
  0x15   :  { %76 = vperm.xlu0 %290, %v41_v2   ;;  %108 = vperm.xlu1 %292, %v41_v2   ;;  %v88_v29 = vrot.slane %v43_v18, %v81_v21  ;;  %v248_v31 = vld [vmem:[%s420_s4] ss:$0 sm:$0xff]  ;;  %v98_v32 = vrot.slane %v42_v17, %v97_v22  ;;  %v104_v33 = vrot.slane %v43_v18, %v97_v22  ;;  %s351_s4 = smov [#allocation5]  }
  0x16   :  { %263 = vmatpush3.msra.mxu0 %v148_v7  ;;  %v114_v34 = vrot.slane %v42_v17, %v113_v25  ;;  %v120_v35 = vrot.slane %v43_v18, %v113_v25  ;;  %v249_v7 = vld [vmem:[%s422_s6] ss:$0 sm:$0xff]  ;;  %s238_s15 = sshll.u32 %s351_s4, 4  ;;  %s239_s15 = int_to_ptr.vmem [resolvable:$true] %s238_s15 }
  0x17   :  { %264 = vmatprep.subr.mxu0 %v349_v6  ;;  %s318_s16 = scalar_lea.vmem %s239_s15, 128  ;;  %p323_p6 = scmp.lt.s32.totalorder %s239_s15, %s239_s15 }
  0x18   :  { %265 = vmatpush3.msra.mxu0 %v147_v8  ;;  %p319_p5 = scmp.ne.s32.totalorder %s239_s15, %s318_s16  ;;  %p324_p7 = scmp.lt.s32.totalorder %s318_s16, %s318_s16 }
  0x19   :  { %293 = vset.pattern.permute.xlu0 %v348_v4  ;;  %266 = vmatprep.subr.mxu0 %v349_v6 }
  0x1a   :  { %267 = vmatpush3.msra.mxu0 %v146_v9  ;;  %p325_p8 = por %p324_p7, %p323_p6 }
  0x1b   :  { %268 = vmatprep.subr.mxu0 %v349_v6 }
  0x1c   :  { %269 = vmatpush3.msra.mxu0 %v145_v10  ;;  %p326_p9 = pnand %p325_p8, %p319_p5 }
  0x1d   :  { %270 = vmatprep.subr.mxu0 %v349_v6 }
  0x1e   :  { %271 = vmatpush3.msra.mxu0 %v144_v11 }
  0x1f   :  { %272 = vmatprep.subr.mxu0 %v349_v6 }
  0x20   :  { %273 = vmatpush3.msra.mxu0 %v143_v12 }
  0x21   :  { %274 = vmatprep.subr.mxu0 %v349_v6 }
  0x22   :  { %275 = vmatpush3.msra.mxu0 %v142_v13 }
  0x8b   :  { %v49_v23 = vpop.permute.xlu0 %48  ;;  %v93_v24 = vpop.permute.xlu1 %92 }
  0x8c   :  { %v55_v26 = vmul.f32 %v54_v19, %v49_v23  ;;  %v67_v27 = vmul.f32 %v66_v20, %v49_v23  ;;  %v99_v42 = vmul.f32 %v98_v32, %v93_v24  ;;  %v105_v43 = vmul.f32 %v104_v33, %v93_v24 }
  0x8e   :  { %v62_v38 = vadd.f32 %v247_v30, %v55_v26  ;;  %v74_v39 = vadd.f32 %v248_v31, %v67_v27 }
  0x90   :  { %v77_v36 = vpop.permute.xlu0 %76  ;;  %v109_v37 = vpop.permute.xlu1 %108 }
  0x91   :  { %v83_v40 = vmul.f32 %v82_v28, %v77_v36  ;;  %v89_v41 = vmul.f32 %v88_v29, %v77_v36  ;;  %v115_v46 = vmul.f32 %v114_v34, %v109_v37  ;;  %v121_v47 = vmul.f32 %v120_v35, %v109_v37 }
  0x93   :  { %v84_v44 = vadd.f32 %v83_v40, %v62_v38  ;;  %v90_v45 = vadd.f32 %v89_v41, %v74_v39 }
  0x95   :  { %v100_v48 = vadd.f32 %v99_v42, %v84_v44  ;;  %v106_v49 = vadd.f32 %v105_v43, %v90_v45 }
  0x97   :  { %v116_v50 = vadd.f32 %v115_v46, %v100_v48  ;;  %v122_v51 = vadd.f32 %v121_v47, %v106_v49 }
  0x99   :  { %v124_v52 = vmul.f32 %v116_v50, %v116_v50  ;;  %v133_v53 = vmul.f32 %v122_v51, %v122_v51  ;;  %v123_v0 = vmul.f32 0.5, %v116_v50  ;;  %v132_v2 = vmul.f32 0.5, %v122_v51 }
  0x9b   :  { %v125_v54 = vmul.f32 %v124_v52, %v116_v50  ;;  %v134_v55 = vmul.f32 %v133_v53, %v122_v51 }
  0x9d   :  { %v126_v56 = vmul.f32 0.044715, %v125_v54  ;;  %v135_v57 = vmul.f32 0.044715, %v134_v55 }
  0x9f   :  { %v127_v58 = vadd.f32 %v126_v56, %v116_v50  ;;  %v136_v59 = vadd.f32 %v135_v57, %v122_v51 }
  0xa1   :  { %v128_v60 = vmul.f32 0.7978846, %v127_v58  ;;  %v137_v61 = vmul.f32 0.7978846, %v136_v59 }
  0xa3   :  { %294 = vtanh.f32 %v128_v60 }
  0xa4   :  { %296 = vtanh.f32 %v137_v61 }
  0xb0   :  { %v295_v62 = vpop.eup %294 }
  0xb1   :  { %v297_v63 = vpop.eup %296  ;;  %v130_v1 = vadd.f32 1.0, %v295_v62 }
  0xb2   :  { %v139_v3 = vadd.f32 1.0, %v297_v63 }
  0xb3   :  { %v131_v4 = vmul.f32 %v130_v1, %v123_v0 }
  0xb4   :  { %v140_v5 = vmul.f32 %v139_v3, %v132_v2 }
  0xb6   :  { %v141_v6 = vmul.f32 %v140_v5, %v131_v4 }
  0xb8   :  { %277 = vmatmul.mubr.msk.f32.vlgmr.msra.gmra.mxu0 %vm157_vm1, %v141_v6 }
 0x178   :  { %v227_v8 = vpop.f32.mrf.mxu0 }
 0x179   :  { %v228_v9 = vadd.f32 %v249_v7, %v227_v8 }
 0x17a   :  { %v278_v10 = vpop.f32.mrf.mxu0 }
 0x17b   :  { %231 = vst [vmem:[#allocation5] sm:$0xff] %v228_v9 }
 0x17c   :  { %329 = shalt.err (!%p326_p9)
}
 0x17d   :  { %241 = dma.vmem_to_hbm [thread:$0]  %s239_s15, 128, %s423_s7, [#allocation4]  }
 0x17e   :  { %340 = dma.done.wait [#allocation4], 128  }
 0x17f   :  { %341 = vsyncadd [#allocation4], 4294967168 }
 0x180   :  { %245 = vsyncpa [#allocation3], 1 }
 0x181   :  { %246 = vsyncpa [#allocation4], 1 }

</bundles_post_ra>
